<compile_context>
chip_gen: v5e
topology: v5e:2x2
jax: 0.10.0
libtpu: 0.0.40
codegen_flags: <defaults>
</compile_context>

<pallas_src>
import jax
import jax.numpy as jnp
from jax.experimental import pallas as pl
from jax.experimental.pallas import tpu as pltpu


def conv1x1_bn_relu_kernel(w_ref, b_ref, x_ref, o_ref):
    """Fused 1x1 conv + folded BN + ReLU on (TN, C, TS, 128) slabs.

    w_ref: SMEM (C_in, C_out)   conv weight with BN scale folded in
    b_ref: SMEM (C_out,)        folded bias = (conv_b - mean)*scale + beta
    x_ref: VMEM (TN, C_in,  TS, 128)  dense (8,128)-aligned spatial slabs
    o_ref: VMEM (TN, C_out, TS, 128)
    """
    c_in = x_ref.shape[1]
    c_out = o_ref.shape[1]

    # f32 accumulation regardless of I/O dtype (matters for bf16 inputs).
    x = x_ref[...].astype(jnp.float32)                # (TN, C_in, TS, 128)

    outs = []
    for co in range(c_out):
        # Bias folded into the first FMA; 9-term VPU FMA chain.  Do NOT use
        # the MXU here: a 3-wide contraction wastes >97% of the systolic array.
        acc = x[:, 0] * w_ref[0, co] + b_ref[co]
        for ci in range(1, c_in):
            acc = acc + x[:, ci] * w_ref[ci, co]
        outs.append(jnp.maximum(acc, 0.0))

    # One dense store of the whole output block (no masked per-channel stores).
    o_ref[...] = jnp.stack(outs, axis=1).astype(o_ref.dtype)


def _round_up(x, m):
    return (x + m - 1) // m * m


def net_forward(x_nchw, conv_w, conv_b, bn_gamma, bn_beta, bn_mean, bn_var,
                eps=1e-5):
    """Reproduces Net.forward: returns (x, y) with y = relu(bn(conv1x1(x)))."""
    # TODO(synk): training-mode BatchNorm (batch statistics) not implemented;
    #             inference-mode running-stats semantics are used instead.
    n, c_in, h, w = x_nchw.shape
    c_out = conv_w.shape[0]
    hw = h * w

    # Fold conv bias + BN (inference) into a per-channel affine, and fold the
    # BN scale straight into the 1x1 weights (wrapper-side constant folding).
    scale = (bn_gamma / jnp.sqrt(bn_var + eps)).astype(jnp.float32)       # (Cout,)
    bias = ((conv_b - bn_mean) * scale + bn_beta).astype(jnp.float32)     # (Cout,)
    w_folded = (conv_w.reshape(c_out, c_in).T.astype(jnp.float32)
                * scale[None, :])                                         # (Cin, Cout)

    # NCHW -> (N, C, HW) is a free reshape; then repack the spatial axis into
    # dense (S, 128) slabs so vregs are fully occupied on the sublane axis.
    x3 = x_nchw.reshape(n, c_in, hw)
    hw_pad = _round_up(hw, 128)
    if hw_pad != hw:
        x3 = jnp.pad(x3, ((0, 0), (0, 0), (0, hw_pad - hw)))
    s = hw_pad // 128

    # Spatial tile: up to 2048 rows x 128 lanes = 256K elements per tile.
    # In+out, 3ch f32, double-buffered ~= 12.6 MiB per step: fits v5e's 16 MiB
    # default scoped VMEM and leaves headroom on v7x's 32 MiB scoped / 64 MiB.
    ts = min(s, 2048)
    s_pad = _round_up(s, ts)
    if s_pad != s:
        x3 = jnp.pad(x3, ((0, 0), (0, 0), (0, (s_pad - s) * 128)))
    x4 = x3.reshape(n, c_in, s_pad, 128)

    # Tiny problems: collapse batch into a single grid step (everything else is
    # pure ~0.35us/step launch overhead).  Large problems: keep (N, spatial)
    # on a ("parallel","parallel") grid so v7x can shard across its 2 TCs.
    whole_bytes = n * (c_in + c_out) * s_pad * 128 * x4.dtype.itemsize * 2
    tn = n if (s_pad == ts and whole_bytes <= (8 << 20)) else 1
    grid = (n // tn, s_pad // ts)

    y4 = pl.pallas_call(
        conv1x1_bn_relu_kernel,
        out_shape=jax.ShapeDtypeStruct((n, c_out, s_pad, 128), x_nchw.dtype),
        grid=grid,
        in_specs=[
            # 9 weights + 3 biases live in SMEM, read on the scalar path.
            pl.BlockSpec(memory_space=pltpu.MemorySpace.SMEM),
            pl.BlockSpec(memory_space=pltpu.MemorySpace.SMEM),
            pl.BlockSpec((tn, c_in, ts, 128), lambda i, j: (i, 0, j, 0)),
        ],
        out_specs=pl.BlockSpec((tn, c_out, ts, 128), lambda i, j: (i, 0, j, 0)),
        compiler_params=pltpu.CompilerParams(
            dimension_semantics=("parallel", "parallel"),
            vmem_limit_bytes=32 * 1024 * 1024),
    )(w_folded, bias, x4)

    # Undo the spatial padding (no-op when HW is already a multiple of 128).
    y3 = y4.reshape(n, c_out, s_pad * 128)
    if s_pad * 128 != hw:
        y3 = y3[:, :, :hw]
    y_nchw = y3.reshape(n, c_out, h, w)
    return x_nchw, y_nchw


if __name__ == "__main__":
    key = jax.random.PRNGKey(0)
    k_x, k_w, k_b = jax.random.split(key, 3)

    N, C, H, W = 2, 3, 16, 16
    x = jax.random.normal(k_x, (N, C, H, W), dtype=jnp.float32)

    # Deterministic synthetic parameters (no checkpoint load).
    conv_w = jax.random.normal(k_w, (C, C, 1, 1), dtype=jnp.float32) * 0.1
    conv_b = jax.random.normal(k_b, (C,), dtype=jnp.float32) * 0.1
    bn_gamma = jnp.ones((C,), jnp.float32)
    bn_beta = jnp.zeros((C,), jnp.float32)
    bn_mean = jnp.zeros((C,), jnp.float32)   # running stats (eval-mode BN)
    bn_var = jnp.ones((C,), jnp.float32)

    x_out, y_out = net_forward(x, conv_w, conv_b, bn_gamma, bn_beta,
                               bn_mean, bn_var)
    jax.block_until_ready((x_out, y_out))

    # Pure-JAX reference (eval-mode BN).
    eps = 1e-5
    w_mat = conv_w.reshape(C, C)                           # (Cout, Cin)
    y_ref = jnp.einsum('oc,nchw->nohw', w_mat, x) + conv_b[None, :, None, None]
    scale = bn_gamma / jnp.sqrt(bn_var + eps)
    y_ref = (y_ref - bn_mean[None, :, None, None]) * scale[None, :, None, None] \
        + bn_beta[None, :, None, None]
    y_ref = jnp.maximum(y_ref, 0.0)

    assert jnp.allclose(y_out, y_ref, atol=1e-5, rtol=1e-5)
    assert jnp.array_equal(x_out, x)

    print("KERNEL_OK")
</pallas_src>

<mosaic_0001>
module attributes {stable_mosaic.version = 11 : i64} {
  func.func @conv1x1_bn_relu_kernel(%arg0: i32, %arg1: i32, %arg2: memref<3x3xf32, #tpu.memory_space<smem>>, %arg3: memref<3xf32, #tpu.memory_space<smem>>, %arg4: memref<2x3x2x128xf32, #tpu.memory_space<vmem>>, %arg5: memref<2x3x2x128xf32, #tpu.memory_space<vmem>>) attributes {dimension_semantics = [#tpu.dimension_semantics<parallel>, #tpu.dimension_semantics<parallel>], iteration_bounds = array<i64: 1, 1>, scalar_prefetch = 0 : i64, scratch_operands = 0 : i64, tpu.core_type = #tpu.core_type<tc>, window_params = [{transform_indices = @transform_0, window_bounds = array<i64: 3, 3>}, {transform_indices = @transform_1, window_bounds = array<i64: 3>}, {transform_indices = @transform_2, window_bounds = array<i64: 2, 3, 2, 128>}, {transform_indices = @transform_3, window_bounds = array<i64: 2, 3, 2, 128>}]} {
    %c0 = arith.constant 0 : index
    %c0_0 = arith.constant 0 : index
    %c0_1 = arith.constant 0 : index
    %c0_2 = arith.constant 0 : index
    %0 = vector.load %arg4[%c0, %c0_0, %c0_1, %c0_2] : memref<2x3x2x128xf32, #tpu.memory_space<vmem>>, vector<2x3x2x128xf32>
    %1 = vector.extract_strided_slice %0 {offsets = [0, 0, 0, 0], sizes = [2, 1, 2, 128], strides = [1, 1, 1, 1]} : vector<2x3x2x128xf32> to vector<2x1x2x128xf32>
    %2 = vector.shape_cast %1 : vector<2x1x2x128xf32> to vector<2x2x128xf32>
    %c0_3 = arith.constant 0 : index
    %c0_4 = arith.constant 0 : index
    %3 = memref.load %arg2[%c0_3, %c0_4] : memref<3x3xf32, #tpu.memory_space<smem>>
    %4 = vector.broadcast %3 : f32 to vector<2x2x128xf32>
    %5 = arith.mulf %2, %4 : vector<2x2x128xf32>
    %c0_5 = arith.constant 0 : index
    %6 = memref.load %arg3[%c0_5] : memref<3xf32, #tpu.memory_space<smem>>
    %7 = vector.broadcast %6 : f32 to vector<2x2x128xf32>
    %8 = arith.addf %5, %7 : vector<2x2x128xf32>
    %9 = vector.extract_strided_slice %0 {offsets = [0, 1, 0, 0], sizes = [2, 1, 2, 128], strides = [1, 1, 1, 1]} : vector<2x3x2x128xf32> to vector<2x1x2x128xf32>
    %10 = vector.shape_cast %9 : vector<2x1x2x128xf32> to vector<2x2x128xf32>
    %c1 = arith.constant 1 : index
    %c0_6 = arith.constant 0 : index
    %11 = memref.load %arg2[%c1, %c0_6] : memref<3x3xf32, #tpu.memory_space<smem>>
    %12 = vector.broadcast %11 : f32 to vector<2x2x128xf32>
    %13 = arith.mulf %10, %12 : vector<2x2x128xf32>
    %14 = arith.addf %8, %13 : vector<2x2x128xf32>
    %15 = vector.extract_strided_slice %0 {offsets = [0, 2, 0, 0], sizes = [2, 1, 2, 128], strides = [1, 1, 1, 1]} : vector<2x3x2x128xf32> to vector<2x1x2x128xf32>
    %16 = vector.shape_cast %15 : vector<2x1x2x128xf32> to vector<2x2x128xf32>
    %c2 = arith.constant 2 : index
    %c0_7 = arith.constant 0 : index
    %17 = memref.load %arg2[%c2, %c0_7] : memref<3x3xf32, #tpu.memory_space<smem>>
    %18 = vector.broadcast %17 : f32 to vector<2x2x128xf32>
    %19 = arith.mulf %16, %18 : vector<2x2x128xf32>
    %20 = arith.addf %14, %19 : vector<2x2x128xf32>
    %cst = arith.constant 0.000000e+00 : f32
    %21 = vector.broadcast %cst : f32 to vector<2x2x128xf32>
    %22 = arith.maximumf %20, %21 : vector<2x2x128xf32>
    %23 = vector.extract_strided_slice %0 {offsets = [0, 0, 0, 0], sizes = [2, 1, 2, 128], strides = [1, 1, 1, 1]} : vector<2x3x2x128xf32> to vector<2x1x2x128xf32>
    %24 = vector.shape_cast %23 : vector<2x1x2x128xf32> to vector<2x2x128xf32>
    %c0_8 = arith.constant 0 : index
    %c1_9 = arith.constant 1 : index
    %25 = memref.load %arg2[%c0_8, %c1_9] : memref<3x3xf32, #tpu.memory_space<smem>>
    %26 = vector.broadcast %25 : f32 to vector<2x2x128xf32>
    %27 = arith.mulf %24, %26 : vector<2x2x128xf32>
    %c1_10 = arith.constant 1 : index
    %28 = memref.load %arg3[%c1_10] : memref<3xf32, #tpu.memory_space<smem>>
    %29 = vector.broadcast %28 : f32 to vector<2x2x128xf32>
    %30 = arith.addf %27, %29 : vector<2x2x128xf32>
    %31 = vector.extract_strided_slice %0 {offsets = [0, 1, 0, 0], sizes = [2, 1, 2, 128], strides = [1, 1, 1, 1]} : vector<2x3x2x128xf32> to vector<2x1x2x128xf32>
    %32 = vector.shape_cast %31 : vector<2x1x2x128xf32> to vector<2x2x128xf32>
    %c1_11 = arith.constant 1 : index
    %c1_12 = arith.constant 1 : index
    %33 = memref.load %arg2[%c1_11, %c1_12] : memref<3x3xf32, #tpu.memory_space<smem>>
    %34 = vector.broadcast %33 : f32 to vector<2x2x128xf32>
    %35 = arith.mulf %32, %34 : vector<2x2x128xf32>
    %36 = arith.addf %30, %35 : vector<2x2x128xf32>
    %37 = vector.extract_strided_slice %0 {offsets = [0, 2, 0, 0], sizes = [2, 1, 2, 128], strides = [1, 1, 1, 1]} : vector<2x3x2x128xf32> to vector<2x1x2x128xf32>
    %38 = vector.shape_cast %37 : vector<2x1x2x128xf32> to vector<2x2x128xf32>
    %c2_13 = arith.constant 2 : index
    %c1_14 = arith.constant 1 : index
    %39 = memref.load %arg2[%c2_13, %c1_14] : memref<3x3xf32, #tpu.memory_space<smem>>
    %40 = vector.broadcast %39 : f32 to vector<2x2x128xf32>
    %41 = arith.mulf %38, %40 : vector<2x2x128xf32>
    %42 = arith.addf %36, %41 : vector<2x2x128xf32>
    %cst_15 = arith.constant 0.000000e+00 : f32
    %43 = vector.broadcast %cst_15 : f32 to vector<2x2x128xf32>
    %44 = arith.maximumf %42, %43 : vector<2x2x128xf32>
    %45 = vector.extract_strided_slice %0 {offsets = [0, 0, 0, 0], sizes = [2, 1, 2, 128], strides = [1, 1, 1, 1]} : vector<2x3x2x128xf32> to vector<2x1x2x128xf32>
    %46 = vector.shape_cast %45 : vector<2x1x2x128xf32> to vector<2x2x128xf32>
    %c0_16 = arith.constant 0 : index
    %c2_17 = arith.constant 2 : index
    %47 = memref.load %arg2[%c0_16, %c2_17] : memref<3x3xf32, #tpu.memory_space<smem>>
    %48 = vector.broadcast %47 : f32 to vector<2x2x128xf32>
    %49 = arith.mulf %46, %48 : vector<2x2x128xf32>
    %c2_18 = arith.constant 2 : index
    %50 = memref.load %arg3[%c2_18] : memref<3xf32, #tpu.memory_space<smem>>
    %51 = vector.broadcast %50 : f32 to vector<2x2x128xf32>
    %52 = arith.addf %49, %51 : vector<2x2x128xf32>
    %53 = vector.extract_strided_slice %0 {offsets = [0, 1, 0, 0], sizes = [2, 1, 2, 128], strides = [1, 1, 1, 1]} : vector<2x3x2x128xf32> to vector<2x1x2x128xf32>
    %54 = vector.shape_cast %53 : vector<2x1x2x128xf32> to vector<2x2x128xf32>
    %c1_19 = arith.constant 1 : index
    %c2_20 = arith.constant 2 : index
    %55 = memref.load %arg2[%c1_19, %c2_20] : memref<3x3xf32, #tpu.memory_space<smem>>
    %56 = vector.broadcast %55 : f32 to vector<2x2x128xf32>
    %57 = arith.mulf %54, %56 : vector<2x2x128xf32>
    %58 = arith.addf %52, %57 : vector<2x2x128xf32>
    %59 = vector.extract_strided_slice %0 {offsets = [0, 2, 0, 0], sizes = [2, 1, 2, 128], strides = [1, 1, 1, 1]} : vector<2x3x2x128xf32> to vector<2x1x2x128xf32>
    %60 = vector.shape_cast %59 : vector<2x1x2x128xf32> to vector<2x2x128xf32>
    %c2_21 = arith.constant 2 : index
    %c2_22 = arith.constant 2 : index
    %61 = memref.load %arg2[%c2_21, %c2_22] : memref<3x3xf32, #tpu.memory_space<smem>>
    %62 = vector.broadcast %61 : f32 to vector<2x2x128xf32>
    %63 = arith.mulf %60, %62 : vector<2x2x128xf32>
    %64 = arith.addf %58, %63 : vector<2x2x128xf32>
    %cst_23 = arith.constant 0.000000e+00 : f32
    %65 = vector.broadcast %cst_23 : f32 to vector<2x2x128xf32>
    %66 = arith.maximumf %64, %65 : vector<2x2x128xf32>
    %67 = vector.shape_cast %22 : vector<2x2x128xf32> to vector<2x1x2x128xf32>
    %68 = vector.shape_cast %44 : vector<2x2x128xf32> to vector<2x1x2x128xf32>
    %69 = vector.shape_cast %66 : vector<2x2x128xf32> to vector<2x1x2x128xf32>
    %70 = tpu.concatenate %67, %68, %69 in 1 : vector<2x1x2x128xf32>, vector<2x1x2x128xf32>, vector<2x1x2x128xf32> -> vector<2x3x2x128xf32>
    %c0_24 = arith.constant 0 : index
    %c0_25 = arith.constant 0 : index
    %c0_26 = arith.constant 0 : index
    %c0_27 = arith.constant 0 : index
    %71 = vector.load %arg5[%c0_24, %c0_25, %c0_26, %c0_27] : memref<2x3x2x128xf32, #tpu.memory_space<vmem>>, vector<2x3x2x128xf32>
    tpu.vector_store %arg5[%c0_24, %c0_25, %c0_26, %c0_27], %70 {strides = array<i32>} : memref<2x3x2x128xf32, #tpu.memory_space<vmem>>, vector<2x3x2x128xf32>,
    return
  }
  func.func @transform_0(%arg0: i32, %arg1: i32) -> (i32, i32) {
    %c0_i32 = arith.constant 0 : i32
    %c0_i32_0 = arith.constant 0 : i32
    %c0_i32_1 = arith.constant 0 : i32
    return %c0_i32, %c0_i32_0 : i32, i32
  }
  func.func @transform_1(%arg0: i32, %arg1: i32) -> i32 {
    %c0_i32 = arith.constant 0 : i32
    %c0_i32_0 = arith.constant 0 : i32
    return %c0_i32 : i32
  }
  func.func @transform_2(%arg0: i32, %arg1: i32) -> (i32, i32, i32, i32) {
    %c0_i32 = arith.constant 0 : i32
    %c0_i32_0 = arith.constant 0 : i32
    %c0_i32_1 = arith.constant 0 : i32
    return %arg0, %c0_i32, %arg1, %c0_i32_0 : i32, i32, i32, i32
  }
  func.func @transform_3(%arg0: i32, %arg1: i32) -> (i32, i32, i32, i32) {
    %c0_i32 = arith.constant 0 : i32
    %c0_i32_0 = arith.constant 0 : i32
    %c0_i32_1 = arith.constant 0 : i32
    return %arg0, %c0_i32, %arg1, %c0_i32_0 : i32, i32, i32, i32
  }
}

</mosaic_0001>

<bundles_post_ra>
// kernel: tpu_custom_call.1
= control target key start
LH: loop header
LB: loop body
LE: loop exit
PB: predicated region body
PF: predicated region fallthrough
CT: control target
= control target key end

     0   :  { %8 = vsyncpa [#allocation5], 0  ;;  %s316_s0 = inlined_call_operand.hbm [shape: f32[3,3], index: 0, kind: input, shape index: {}]   ;;  %s317_s1 = inlined_call_operand.hbm [shape: f32[3], index: 1, kind: input, shape index: {}]   ;;  %s318_s2 = inlined_call_operand.hbm [shape: f32[2,3,2,128], index: 2, kind: input, shape index: {}]   ;;  %s319_s3 = inlined_call_operand.hbm [shape: f32[2,3,2,128], index: 3, kind: output, shape index: {}]  }
   0x1   :  { %9 = vsyncpa [#allocation7], 0 }
   0x2   :  { %10 = vsyncpa [#allocation3], 0 }
   0x3   :  { %11 = vsyncpa [#allocation4], 0  ;;  %s17_s14 = sshll.u32 %s316_s0, 4  ;;  %s26_s17 = sshll.u32 %s317_s1, 4  ;;  %s18_s14 = int_to_ptr.hbm [resolvable:$true] %s17_s14  ;;  %s27_s17 = int_to_ptr.hbm [resolvable:$true] %s26_s17 }
   0x4   :  { %s251_s18 = smov [#allocation2]   ;;  %s252_s19 = smov [#allocation6]  }
   0x5   :  { %20 = dma.hbm_to_smem %s18_s14, 64, %s251_s18, [#allocation5]  }
   0x6   :  { %29 = dma.hbm_to_smem %s27_s17, 16, %s252_s19, [#allocation7]  }
   0x7   :  { %s34_s22 = sshll.u32 %s318_s2, 4  ;;  %s253_s23 = smov [#allocation8]   ;;  %s35_s22 = int_to_ptr.hbm [resolvable:$true] %s34_s22 }
   0x8   :  { %s36_s24 = sshll.u32 %s253_s23, 4  ;;  %s254_s25 = smov 32   ;;  %s37_s24 = int_to_ptr.vmem [resolvable:$true] %s36_s24 }
   0x9   :  { %s255_s0 = smov 2  }
   0xa   :  { %42 = dma.hbm_to_vmem [thread:$0]  %s35_s22, 192, %s37_s24, [#allocation3], %s254_s25, %s254_s25, %s255_s0  }
   0xb   :  { %243 = dma.done.wait [#allocation5], 64  }
   0xc   :  { %244 = vsyncadd [#allocation5], 4294967232 }
   0xd   :  { %245 = dma.done.wait [#allocation7], 16  }
   0xe   :  { %246 = vsyncadd [#allocation7], 4294967280 }
   0xf   :  { %247 = dma.done.wait [#allocation3], 192  }
  0x10   :  { %248 = vsyncadd [#allocation3], 4294967104 }
  0x11   :  { %55 = sfence }
  0x12   :  { %s62_s1 = sld [smem:[#allocation2]]  ;;  %v56_v0 = vld [vmem:[#allocation8] sm:$0x3]  ;;  %v59_v1 = vld [vmem:[#allocation8 + $0x6] sm:$0x3]  ;;  %s256_s9 = smov [#allocation9]  }
  0x13   :  { %s66_s26 = sld [smem:[#allocation6]]  ;;  %v57_v2 = vld [vmem:[#allocation8 + $0x2] sm:$0x3]  ;;  %v58_v3 = vld [vmem:[#allocation8 + $0x4] sm:$0x3]  ;;  %s138_s10 = sshll.u32 %s256_s9, 4  ;;  %s139_s10 = int_to_ptr.vmem [resolvable:$true] %s138_s10 }
  0x14   :  { %s155_s2 = sld [smem:[#allocation2 + $0x80]]  ;;  %v60_v7 = vld [vmem:[#allocation8 + $0x8] sm:$0x3]  ;;  %v61_v8 = vld [vmem:[#allocation8 + $0xa] sm:$0x3]  ;;  %s140_s13 = sshll.u32 %s319_s3, 4  ;;  %s141_s13 = int_to_ptr.hbm [resolvable:$true] %s140_s13 }
  0x15   :  { %s156_s27 = sld [smem:[#allocation2 + $0x100]] }
  0x16   :  { %s157_s28 = sld [smem:[#allocation2 + $0x1]] }
  0x17   :  { %s289_s29 = sld [smem:[#allocation6 + $0x1]] }
  0x18   :  { %v63_v4 = vstv %s62_s1  ;;  %s291_s30 = sld [smem:[#allocation2 + $0x81]] }
  0x19   :  { %v64_v5 = vmul.f32 %v63_v4, %v56_v0  ;;  %v67_v6 = vstv %s66_s26  ;;  %s293_s4 = sld [smem:[#allocation2 + $0x101]]  ;;  %v65_v9 = vmul.f32 %v63_v4, %v59_v1 }
  0x1a   :  { %v71_v10 = vstv %s155_s2  ;;  %s295_s5 = sld [smem:[#allocation2 + $0x2]] }
  0x1b   :  { %v68_v11 = vadd.f32 %v67_v6, %v64_v5  ;;  %v72_v12 = vmul.f32 %v71_v10, %v57_v2  ;;  %v77_v13 = vstv %s156_s27  ;;  %s297_s6 = sld [smem:[#allocation6 + $0x2]]  ;;  %v69_v14 = vadd.f32 %v67_v6, %v65_v9 }
  0x1c   :  { %v78_v15 = vmul.f32 %v77_v13, %v58_v3  ;;  %v85_v16 = vstv %s157_s28  ;;  %s299_s7 = sld [smem:[#allocation2 + $0x82]]  ;;  %v73_v17 = vmul.f32 %v71_v10, %v60_v7  ;;  %v79_v18 = vmul.f32 %v77_v13, %v61_v8 }
  0x1d   :  { %v74_v19 = vadd.f32 %v72_v12, %v68_v11  ;;  %v86_v20 = vmul.f32 %v85_v16, %v56_v0  ;;  %v89_v21 = vstv %s289_s29  ;;  %s302_s8 = sld [smem:[#allocation2 + $0x102]]  ;;  %v87_v22 = vmul.f32 %v85_v16, %v59_v1 }
  0x1e   :  { %v93_v23 = vstv %s291_s30  ;;  %v75_v24 = vadd.f32 %v73_v17, %v69_v14 }
  0x1f   :  { %v80_v25 = vadd.f32 %v78_v15, %v74_v19  ;;  %v90_v26 = vadd.f32 %v89_v21, %v86_v20  ;;  %v94_v27 = vmul.f32 %v93_v23, %v57_v2  ;;  %v99_v28 = vstv %s293_s4 }
  0x20   :  { %v100_v29 = vmul.f32 %v99_v28, %v58_v3  ;;  %v107_v30 = vstv %s295_s5  ;;  %v81_v31 = vadd.f32 %v79_v18, %v75_v24  ;;  %v91_v32 = vadd.f32 %v89_v21, %v87_v22 }
  0x21   :  { %v82_v33 = vmax.f32 %v80_v25, 0.0  ;;  %v96_v34 = vadd.f32 %v94_v27, %v90_v26  ;;  %v108_v35 = vmul.f32 %v107_v30, %v56_v0  ;;  %v111_v36 = vstv %s297_s6 }
  0x22   :  { %v115_v37 = vstv %s299_s7  ;;  %v83_v38 = vmax.f32 %v81_v31, 0.0  ;;  %v95_v39 = vmul.f32 %v93_v23, %v60_v7  ;;  %v101_v40 = vmul.f32 %v99_v28, %v61_v8 }
  0x23   :  { %128 = vst [vmem:[#allocation9] sm:$0x3] %v82_v33  ;;  %v102_v41 = vadd.f32 %v100_v29, %v96_v34  ;;  %v112_v42 = vadd.f32 %v111_v36, %v108_v35  ;;  %v116_v43 = vmul.f32 %v115_v37, %v57_v2  ;;  %v121_v44 = vstv %s302_s8 }
  0x24   :  { %v122_v45 = vmul.f32 %v121_v44, %v58_v3  ;;  %131 = vst [vmem:[#allocation9 + $0x6] sm:$0x3] %v83_v38  ;;  %v97_v46 = vadd.f32 %v95_v39, %v91_v32  ;;  %v109_v47 = vmul.f32 %v107_v30, %v59_v1  ;;  %v117_v48 = vmul.f32 %v115_v37, %v60_v7 }
  0x25   :  { %v104_v49 = vmax.f32 %v102_v41, 0.0  ;;  %v118_v50 = vadd.f32 %v116_v43, %v112_v42  ;;  %v123_v53 = vmul.f32 %v121_v44, %v61_v8 }
  0x26   :  { %v103_v51 = vadd.f32 %v101_v40, %v97_v46  ;;  %v113_v52 = vadd.f32 %v111_v36, %v109_v47 }
  0x27   :  { %129 = vst [vmem:[#allocation9 + $0x2] sm:$0x3] %v104_v49  ;;  %v124_v54 = vadd.f32 %v122_v45, %v118_v50 }
  0x28   :  { %v105_v55 = vmax.f32 %v103_v51, 0.0  ;;  %v119_v56 = vadd.f32 %v117_v48, %v113_v52 }
  0x29   :  { %v126_v57 = vmax.f32 %v124_v54, 0.0 }
  0x2a   :  { %132 = vst [vmem:[#allocation9 + $0x8] sm:$0x3] %v105_v55  ;;  %v125_v58 = vadd.f32 %v123_v53, %v119_v56 }
  0x2b   :  { %130 = vst [vmem:[#allocation9 + $0x4] sm:$0x3] %v126_v57 }
  0x2c   :  { %v127_v59 = vmax.f32 %v125_v58, 0.0 }
  0x2e   :  { %133 = vst [vmem:[#allocation9 + $0xa] sm:$0x3] %v127_v59 }
  0x2f   :  { %146 = dma.vmem_to_hbm [thread:$0]  %s139_s10, 192, %s141_s13, [#allocation4], %s254_s25, %s254_s25, %s255_s0  }
  0x30   :  { %249 = dma.done.wait [#allocation4], 192  }
  0x31   :  { %250 = vsyncadd [#allocation4], 4294967104 }
  0x32   :  { %151 = vsyncpa [#allocation3], 1 }
  0x33   :  { %152 = vsyncpa [#allocation4], 1 }
  0x34   :  { %153 = vsyncpa [#allocation5], 1 }
  0x35   :  { %154 = vsyncpa [#allocation7], 1 }

</bundles_post_ra>
